<compile_context>
chip_gen: v7x
topology: tpu7x:2x2x1
jax: 0.10.0
libtpu: 0.0.40
codegen_flags: <defaults>
</compile_context>

<pallas_src>
import functools

import jax
import jax.numpy as jnp
import numpy as np
from jax.experimental import pallas as pl
from jax.experimental.pallas import tpu as pltpu


def _cdiv(a, b):
    return (a + b - 1) // b


def _round_up(a, b):
    return _cdiv(a, b) * b


def _post_attn_kernel(x_ref, mask_ref, w_ref, b_ref, o_ref, *, root_enhance):
    # Block shapes per grid step:
    #   x_ref:    (TB, N, H)  node features, native dtype (f32/bf16) -> MXU
    #   mask_ref: (TB, 1, N)  1.0 at mask_nonzero positions, 0.0 elsewhere
    #   w_ref:    (2, 1, H)   row 0 = w_x, row 1 = w_root (x dtype)
    #   b_ref:    (1, 1)      SMEM f32 bias
    #   o_ref:    (TB, 1, H)  f32 output
    x = x_ref[...]                       # native dtype; no f32 copy of the block
    mask = mask_ref[...]                 # (TB, 1, N) f32
    w = w_ref[...]                       # (2, 1, H)  x dtype
    bias = b_ref[0, 0]                   # f32 scalar (SMEM)

    tb, _, h = x.shape
    # Tiny (TB,1,H) broadcast of the shared weight, kept in x's dtype: it is
    # what the guaranteed-lowerable batched MXU einsum form below needs.
    w_x = jnp.broadcast_to(w[0:1], (tb, 1, h))

    # Lane-dense logits (TB, 1, N): per-batch (1,H)@(H,N) on the MXU with f32
    # accumulation; x stays in its native dtype.
    logits = jnp.einsum('bqh,bnh->bqn', w_x, x,
                        preferred_element_type=jnp.float32) + bias

    if root_enhance:
        # Linear([x, root]) == x @ w_x + mask * <x[:, 0, :], w_root> + bias,
        # because root is x[:, 0, :] at masked positions and 0 elsewhere.
        # Only this tiny (TB,1,H) slice is upcast to f32.
        root_logit = jnp.sum(
            x[:, 0:1, :].astype(jnp.float32) * w[1:2].astype(jnp.float32),
            axis=-1, keepdims=True)                              # (TB, 1, 1)
        logits = logits + mask * root_logit

    # clone/detach trick + masked_fill_(attn == 0, -1e20): keep the (biased)
    # logit only where masked AND nonzero, else -1e20.
    logits = jnp.where((mask > 0.0) & (logits != 0.0), logits,
                       jnp.float32(-1e20))

    # Softmax over the node axis (lanes).
    m = jnp.max(logits, axis=-1, keepdims=True)
    e = jnp.exp(logits - m)
    p = e / jnp.sum(e, axis=-1, keepdims=True)                   # (TB, 1, N) f32

    # matmul(x.permute(0,2,1), attn): weighted node sum on the MXU; p is cast
    # to x's dtype so bf16 x is not upcast for this contraction either.
    out = jnp.einsum('bqn,bnh->bqh', p.astype(x.dtype), x,
                     preferred_element_type=jnp.float32)         # (TB, 1, H)
    o_ref[...] = out.astype(o_ref.dtype)


def _tpu_vmem_and_cores():
    """Best-effort (physical VMEM bytes per TensorCore, TensorCores/device)."""
    vmem = None
    cores = 1
    try:
        info = pltpu.get_tpu_info()
        for name in ("vmem_capacity_bytes", "vmem_size_bytes", "vmem_bytes"):
            v = getattr(info, name, None)
            if v:
                vmem = int(v)
                break
        for name in ("num_tensorcores", "tensorcores_per_chip", "num_cores"):
            c = getattr(info, name, None)
            if c:
                cores = int(c)
                break
    except Exception:
        pass
    kind = ""
    try:
        kind = jax.devices()[0].device_kind.lower()
    except Exception:
        pass
    is_v7 = ("v7" in kind) or ("7x" in kind)
    per_core_cap = (64 if is_v7 else 128) * 1024 * 1024   # v7x halves VMEM/core
    if vmem is None:
        vmem = per_core_cap
    vmem = min(vmem, per_core_cap)       # guard against per-chip reporting
    if is_v7:
        cores = max(cores, 2)
    return vmem, max(1, int(cores))


def post_attn_pallas(x, mask, w, b, root_enhance=False, batch_tile=None):
    """x: [B, N, H] float (f32/bf16), mask: [B, N] bool, w: [Hin, 1], b: scalar."""
    B, N, H = x.shape
    xdt = x.dtype
    x_isz = jnp.dtype(xdt).itemsize

    # Split the linear weight; root row is zeros when root_enhance is False.
    # Weights are passed in x's dtype so the MXU never has to upcast x.
    w_flat = jnp.asarray(w, jnp.float32).reshape(-1)
    if root_enhance:
        assert w_flat.shape[0] == 2 * H
        w2 = jnp.stack([w_flat[:H], w_flat[H:]], axis=0)
    else:
        assert w_flat.shape[0] == H
        w2 = jnp.stack([w_flat, jnp.zeros_like(w_flat)], axis=0)
    w3 = w2.reshape(2, 1, H).astype(xdt)                         # [2, 1, H]
    b2 = jnp.reshape(jnp.asarray(b, jnp.float32), (1, 1))        # SMEM scalar

    mask3 = mask.astype(jnp.float32).reshape(B, 1, N)            # [B, 1, N]

    # ---- per-generation VMEM budget & batch-tile sizing ----
    vmem_phys, n_cores = _tpu_vmem_and_cores()
    vmem_limit = min(100 * 2**20, int(vmem_phys * 0.75))  # ~96MiB v5e/v6e, ~48MiB v7x

    nr = _round_up(N, 16)          # sublane padding of the x block (bf16-safe)
    hr = _round_up(H, 128)         # lane padding of H
    nl = _round_up(N, 128)         # lane padding of N
    per_batch = (
        2 * nr * hr * x_isz        # x block, double-buffered (dominant term)
        + 2 * 8 * nl * 4           # mask block (1 -> 8 sublane pad), double-buffered
        + 2 * 8 * hr * 4           # out block, double-buffered
        + 4 * 8 * nl * 4           # logits / exp / p f32 temps in (.,1,N) form
        + 8 * hr * (4 + x_isz))    # f32 out temp + broadcast weight row
    fixed = 2 * 2 * 8 * hr * x_isz + 4 * 2**20   # replicated weights + headroom

    cap = max(1, (vmem_limit - fixed) // per_batch)
    if batch_tile is not None:
        cap = max(1, min(cap, int(batch_tile)))

    min_tiles = 1
    if n_cores >= 2:
        # v7x: >= 2 grid steps per TensorCore (when B allows) so each core can
        # overlap DMA with compute; single-core chips keep the biggest tile.
        min_tiles = min(B, 2 * n_cores)
    num_tiles = max(min_tiles, _cdiv(B, cap))
    num_tiles = min(num_tiles, B)
    tb = _cdiv(B, num_tiles)       # balanced tiles; last block may be ragged
    num_tiles = _cdiv(B, tb)

    # Make sure the scoped limit covers at least one tile (huge-N*H corner).
    need = tb * per_batch + fixed
    vmem_limit = max(vmem_limit, min(int(vmem_phys * 0.95), int(need)))

    kernel = functools.partial(_post_attn_kernel, root_enhance=root_enhance)
    out = pl.pallas_call(
        kernel,
        out_shape=jax.ShapeDtypeStruct((B, 1, H), jnp.float32),
        grid=(num_tiles,),
        in_specs=[
            pl.BlockSpec((tb, N, H), lambda i: (i, 0, 0)),       # x (native dtype)
            pl.BlockSpec((tb, 1, N), lambda i: (i, 0, 0)),       # mask (lane-dense)
            pl.BlockSpec((2, 1, H), lambda i: (0, 0, 0)),        # weights (replicated)
            pl.BlockSpec(memory_space=pltpu.MemorySpace.SMEM),   # bias scalar
        ],
        out_specs=pl.BlockSpec((tb, 1, H), lambda i: (i, 0, 0)),
        compiler_params=pltpu.CompilerParams(
            dimension_semantics=("parallel",),
            vmem_limit_bytes=int(vmem_limit)),
    )(x, mask3, w3, b2)

    return out.reshape(B, H)   # [B, H]  (matches torch .squeeze() for B > 1)


def post_attn_ref(x, mask, w, b, root_enhance=False):
    """Pure-JAX reference replicating the PyTorch forward."""
    x = x.astype(jnp.float32)
    maskf = mask.astype(jnp.float32)
    if root_enhance:
        root = maskf[:, :, None] * x[:, 0:1, :]
        xa = jnp.concatenate([x, root], axis=-1)
    else:
        xa = x
    attn = xa @ w + b                                     # [B, N, 1]
    attn = jnp.where(maskf[:, :, None] > 0, attn, 0.0)
    attn = jnp.where(attn == 0.0, -1e20, attn)
    attn = jax.nn.softmax(attn, axis=1)
    return jnp.einsum("bnh,bnk->bhk", x, attn)[..., 0]    # [B, H]


if __name__ == "__main__":
    key = jax.random.PRNGKey(0)
    B, N, H = 2, 8, 32
    kx, kw, kb = jax.random.split(key, 3)

    x = jax.random.normal(kx, (B, N, H), dtype=jnp.float32)

    # mask_nonzero = (batch_idx, row_idx): valid node positions per batch
    batch_idx = jnp.array([0, 0, 0, 0, 0, 1, 1, 1, 1, 1, 1], dtype=jnp.int32)
    row_idx = jnp.array([0, 1, 2, 3, 4, 0, 1, 2, 3, 4, 5], dtype=jnp.int32)
    mask = jnp.zeros((B, N), dtype=jnp.bool_).at[batch_idx, row_idx].set(True)

    for root_enhance in (False, True):
        Hin = 2 * H if root_enhance else H
        # deterministic parameter init (synthetic, no checkpoint load)
        w = jax.random.normal(kw, (Hin, 1), dtype=jnp.float32) / jnp.sqrt(Hin)
        b = jax.random.normal(kb, (), dtype=jnp.float32) * 0.01

        out = post_attn_pallas(x, mask, w, b, root_enhance=root_enhance)
        out = jax.block_until_ready(out)
        assert out.shape == (B, H)

        ref = post_attn_ref(x, mask, w, b, root_enhance=root_enhance)
        np.testing.assert_allclose(np.asarray(out), np.asarray(ref),
                                   rtol=1e-5, atol=1e-5)

    # bf16 input path: x and w go to the MXU in bf16 (f32 accumulation).  The
    # reference uses the same bf16-rounded weights; tolerance covers the bf16
    # rounding of the softmax probabilities fed to the second matmul.
    x_bf16 = x.astype(jnp.bfloat16)
    w = jax.random.normal(kw, (H, 1), dtype=jnp.float32) / jnp.sqrt(H)
    b = jax.random.normal(kb, (), dtype=jnp.float32) * 0.01
    out_bf = jax.block_until_ready(post_attn_pallas(x_bf16, mask, w, b))
    w_bf = w.astype(jnp.bfloat16).astype(jnp.float32)
    ref_bf = post_attn_ref(x_bf16.astype(jnp.float32), mask, w_bf, b)
    np.testing.assert_allclose(np.asarray(out_bf), np.asarray(ref_bf),
                               rtol=3e-2, atol=3e-2)

    print("KERNEL_OK")
</pallas_src>

<mosaic_0001>
module attributes {stable_mosaic.version = 11 : i64} {
  func.func @_post_attn_kernel(%arg0: i32, %arg1: memref<2x8x32xf32, #tpu.memory_space<vmem>>, %arg2: memref<2x1x8xf32, #tpu.memory_space<vmem>>, %arg3: memref<2x1x32xf32, #tpu.memory_space<vmem>>, %arg4: memref<1x1xf32, #tpu.memory_space<smem>>, %arg5: memref<2x1x32xf32, #tpu.memory_space<vmem>>) attributes {dimension_semantics = [#tpu.dimension_semantics<parallel>], iteration_bounds = array<i64: 1>, scalar_prefetch = 0 : i64, scratch_operands = 0 : i64, tpu.core_type = #tpu.core_type<tc>, window_params = [{transform_indices = @transform_0, window_bounds = array<i64: 2, 8, 32>}, {transform_indices = @transform_1, window_bounds = array<i64: 2, 1, 8>}, {pipeline_mode = #tpu.pipeline_mode<synchronous>, transform_indices = @transform_2, window_bounds = array<i64: 2, 1, 32>}, {transform_indices = @transform_3, window_bounds = array<i64: 1, 1>}, {transform_indices = @transform_4, window_bounds = array<i64: 2, 1, 32>}]} {
    %c0 = arith.constant 0 : index
    %c0_0 = arith.constant 0 : index
    %c0_1 = arith.constant 0 : index
    %0 = vector.load %arg1[%c0, %c0_0, %c0_1] : memref<2x8x32xf32, #tpu.memory_space<vmem>>, vector<2x8x32xf32>
    %c0_2 = arith.constant 0 : index
    %c0_3 = arith.constant 0 : index
    %c0_4 = arith.constant 0 : index
    %1 = vector.load %arg2[%c0_2, %c0_3, %c0_4] : memref<2x1x8xf32, #tpu.memory_space<vmem>>, vector<2x1x8xf32>
    %c0_5 = arith.constant 0 : index
    %c0_6 = arith.constant 0 : index
    %c0_7 = arith.constant 0 : index
    %2 = vector.load %arg3[%c0_5, %c0_6, %c0_7] : memref<2x1x32xf32, #tpu.memory_space<vmem>>, vector<2x1x32xf32>
    %c0_8 = arith.constant 0 : index
    %c0_9 = arith.constant 0 : index
    %3 = memref.load %arg4[%c0_8, %c0_9] : memref<1x1xf32, #tpu.memory_space<smem>>
    %4 = vector.extract_strided_slice %2 {offsets = [0, 0, 0], sizes = [1, 1, 32], strides = [1, 1, 1]} : vector<2x1x32xf32> to vector<1x1x32xf32>
    %5 = vector.shape_cast %4 : vector<1x1x32xf32> to vector<1x1x32xf32>
    %6 = vector.broadcast %5 : vector<1x1x32xf32> to vector<2x1x32xf32>
    "tpu.trace_start"() <{level = 10 : i32, message = "bqh,bnh->bqn"}> : () -> ()
    %cst = arith.constant dense<0.000000e+00> : vector<2x1x8xf32>
    %7 = tpu.matmul %6, %0, %cst {dimension_numbers = #tpu.dot_dimension_numbers<[2], [2], [1], [1], [0, 0, 0, 1, 1, 1], [0], [0]>} : vector<2x1x32xf32>, vector<2x8x32xf32>, vector<2x1x8xf32> -> vector<2x1x8xf32>
    "tpu.trace_stop"() : () -> ()
    %8 = vector.broadcast %3 : f32 to vector<2x1x8xf32>
    %9 = arith.addf %7, %8 : vector<2x1x8xf32>
    %cst_10 = arith.constant 0.000000e+00 : f32
    %10 = vector.broadcast %cst_10 : f32 to vector<2x1x8xf32>
    %11 = arith.cmpf ogt, %1, %10 : vector<2x1x8xf32>
    %cst_11 = arith.constant 0.000000e+00 : f32
    %12 = vector.broadcast %cst_11 : f32 to vector<2x1x8xf32>
    %13 = arith.cmpf one, %9, %12 : vector<2x1x8xf32>
    %14 = arith.andi %11, %13 : vector<2x1x8xi1>
    %cst_12 = arith.constant -1.000000e+20 : f32
    %15 = vector.broadcast %cst_12 : f32 to vector<2x1x8xf32>
    %16 = arith.select %14, %9, %15 : vector<2x1x8xi1>, vector<2x1x8xf32>
    %cst_13 = arith.constant dense<0xFF800000> : vector<2x1xf32>
    %17 = vector.multi_reduction <maximumf>, %16, %cst_13 [2] : vector<2x1x8xf32> to vector<2x1xf32>
    %18 = vector.shape_cast %17 : vector<2x1xf32> to vector<2x1x1xf32>
    %19 = vector.broadcast %18 : vector<2x1x1xf32> to vector<2x1x8xf32>
    %20 = arith.subf %16, %19 : vector<2x1x8xf32>
    %21 = math.exp %20 : vector<2x1x8xf32>
    %cst_14 = arith.constant dense<0.000000e+00> : vector<2x1xf32>
    %22 = vector.multi_reduction <add>, %21, %cst_14 [2] : vector<2x1x8xf32> to vector<2x1xf32>
    %23 = vector.shape_cast %22 : vector<2x1xf32> to vector<2x1x1xf32>
    %24 = vector.broadcast %23 : vector<2x1x1xf32> to vector<2x1x8xf32>
    %25 = arith.divf %21, %24 : vector<2x1x8xf32>
    "tpu.trace_start"() <{level = 10 : i32, message = "bqn,bnh->bqh"}> : () -> ()
    %cst_15 = arith.constant dense<0.000000e+00> : vector<2x1x32xf32>
    %26 = tpu.matmul %25, %0, %cst_15 {dimension_numbers = #tpu.dot_dimension_numbers<[2], [1], [1], [2], [0, 0, 0, 1, 1, 2], [0], [0]>} : vector<2x1x8xf32>, vector<2x8x32xf32>, vector<2x1x32xf32> -> vector<2x1x32xf32>
    "tpu.trace_stop"() : () -> ()
    %c0_16 = arith.constant 0 : index
    %c0_17 = arith.constant 0 : index
    %c0_18 = arith.constant 0 : index
    %27 = vector.load %arg5[%c0_16, %c0_17, %c0_18] : memref<2x1x32xf32, #tpu.memory_space<vmem>>, vector<2x1x32xf32>
    tpu.vector_store %arg5[%c0_16, %c0_17, %c0_18], %26 {strides = array<i32>} : memref<2x1x32xf32, #tpu.memory_space<vmem>>, vector<2x1x32xf32>,
    return
  }
  func.func @transform_0(%arg0: i32) -> (i32, i32, i32) {
    %c0_i32 = arith.constant 0 : i32
    %c0_i32_0 = arith.constant 0 : i32
    %c0_i32_1 = arith.constant 0 : i32
    return %arg0, %c0_i32, %c0_i32_0 : i32, i32, i32
  }
  func.func @transform_1(%arg0: i32) -> (i32, i32, i32) {
    %c0_i32 = arith.constant 0 : i32
    %c0_i32_0 = arith.constant 0 : i32
    %c0_i32_1 = arith.constant 0 : i32
    return %arg0, %c0_i32, %c0_i32_0 : i32, i32, i32
  }
  func.func @transform_2(%arg0: i32) -> (i32, i32, i32) {
    %c0_i32 = arith.constant 0 : i32
    %c0_i32_0 = arith.constant 0 : i32
    %c0_i32_1 = arith.constant 0 : i32
    %c0_i32_2 = arith.constant 0 : i32
    return %c0_i32, %c0_i32_0, %c0_i32_1 : i32, i32, i32
  }
  func.func @transform_3(%arg0: i32) -> (i32, i32) {
    %c0_i32 = arith.constant 0 : i32
    %c0_i32_0 = arith.constant 0 : i32
    %c0_i32_1 = arith.constant 0 : i32
    return %c0_i32, %c0_i32_0 : i32, i32
  }
  func.func @transform_4(%arg0: i32) -> (i32, i32, i32) {
    %c0_i32 = arith.constant 0 : i32
    %c0_i32_0 = arith.constant 0 : i32
    %c0_i32_1 = arith.constant 0 : i32
    return %arg0, %c0_i32, %c0_i32_0 : i32, i32, i32
  }
}

</mosaic_0001>

<bundles_post_ra>
// kernel: tpu_custom_call.1
= control target key start
LH: loop header
LB: loop body
LE: loop exit
PB: predicated region body
PF: predicated region fallthrough
CT: control target
= control target key end

     0   :  { %10 = vsyncpa [#allocation4], 0  ;;  %s665_s0 = inlined_call_operand.hbm [shape: f32[2,8,32], index: 0, kind: input, shape index: {}]   ;;  %s666_s1 = inlined_call_operand.hbm [shape: f32[2,1,8], index: 1, kind: input, shape index: {}]   ;;  %s667_s2 = inlined_call_operand.hbm [shape: f32[2,1,32], index: 2, kind: input, shape index: {}]   ;;  %s668_s3 = inlined_call_operand.<no memory space> [shape: f32[1,1], index: 3, kind: input, shape index: {}]   ;;  %s669_s4 = inlined_call_operand.hbm [shape: f32[2,1,32], index: 4, kind: output, shape index: {}]  }
   0x1   :  { %11 = vsyncpa [#allocation7], 0 }
   0x2   :  { %12 = vsyncpa [#allocation5], 0  ;;  %s562_s15 = smov [#allocation6]   ;;  %s468_s19 = scalar_lea.hbm %s666_s1, 32 }
   0x3   :  { %s30_s16 = sshll.u32 %s562_s15, 4  ;;  %p469_p0 = scmp.ne.s32.totalorder %s666_s1, %s468_s19  ;;  %s31_s16 = int_to_ptr.vmem [resolvable:$true] %s30_s16 }
   0x4   :  { %p472_p1 = scmp.lt.u32.totalorder %s468_s19, %s666_s1 }
   0x6   :  { %p474_p2 = pnand %p472_p1, %p469_p0 }
   0x8   :  { %477 = shalt.err (!%p474_p2)
}
   0x9   :  { %s478_s24 = scalar_lea.vmem %s31_s16, 32  ;;  %p483_p4 = scmp.lt.s32.totalorder %s31_s16, %s31_s16 }
   0xa   :  { %p479_p3 = scmp.ne.s32.totalorder %s31_s16, %s478_s24  ;;  %p484_p5 = scmp.lt.s32.totalorder %s478_s24, %s478_s24 }
   0xc   :  { %p485_p6 = por %p484_p5, %p483_p4 }
   0xe   :  { %p486_p7 = pnand %p485_p6, %p479_p3 }
  0x10   :  { %489 = shalt.err (!%p486_p7)
}
  0x11   :  { %s563_s25 = smov 16   ;;  %s564_s26 = smov 1  }
  0x12   :  { %36 = dma.hbm_to_vmem [thread:$0]  %s666_s1, 32, %s31_s16, [#allocation7], %s563_s25, %s563_s25, %s564_s26  }
  0x13   :  { %s565_s29 = smov [#allocation3]   ;;  %s490_s7 = scalar_lea.hbm %s665_s0, 256 }
  0x14   :  { %s18_s30 = sshll.u32 %s565_s29, 4  ;;  %p491_p8 = scmp.ne.s32.totalorder %s665_s0, %s490_s7  ;;  %s19_s30 = int_to_ptr.vmem [resolvable:$true] %s18_s30 }
  0x15   :  { %p494_p9 = scmp.lt.u32.totalorder %s490_s7, %s665_s0 }
  0x17   :  { %p496_p10 = pnand %p494_p9, %p491_p8 }
  0x19   :  { %499 = shalt.err (!%p496_p10)
}
  0x1a   :  { %s500_s12 = scalar_lea.vmem %s19_s30, 256  ;;  %p505_p12 = scmp.lt.s32.totalorder %s19_s30, %s19_s30 }
  0x1b   :  { %p501_p11 = scmp.ne.s32.totalorder %s19_s30, %s500_s12  ;;  %p506_p13 = scmp.lt.s32.totalorder %s500_s12, %s500_s12 }
  0x1d   :  { %p507_p0 = por %p506_p13, %p505_p12 }
  0x1f   :  { %p508_p1 = pnand %p507_p0, %p501_p11 }
  0x21   :  { %511 = shalt.err (!%p508_p1)
}
  0x22   :  { %s566_s1 = smov 128   ;;  %s567_s13 = smov 8  }
  0x23   :  { %24 = dma.hbm_to_vmem [thread:$0]  %s665_s0, 256, %s19_s30, [#allocation4], %s566_s1, %s566_s1, %s567_s13  }
  0x24   :  { %s568_s16 = smov [#allocation8]   ;;  %s512_s20 = scalar_lea.hbm %s667_s2, 32 }
  0x25   :  { %s42_s17 = sshll.u32 %s568_s16, 4  ;;  %p513_p2 = scmp.ne.s32.totalorder %s667_s2, %s512_s20  ;;  %s43_s17 = int_to_ptr.vmem [resolvable:$true] %s42_s17 }
  0x26   :  { %p516_p3 = scmp.lt.u32.totalorder %s512_s20, %s667_s2 }
  0x28   :  { %p518_p4 = pnand %p516_p3, %p513_p2 }
  0x2a   :  { %521 = shalt.err (!%p518_p4)
}
  0x2b   :  { %s522_s27 = scalar_lea.vmem %s43_s17, 32  ;;  %p527_p6 = scmp.lt.s32.totalorder %s43_s17, %s43_s17 }
  0x2c   :  { %p523_p5 = scmp.ne.s32.totalorder %s43_s17, %s522_s27  ;;  %p528_p7 = scmp.lt.s32.totalorder %s522_s27, %s522_s27 }
  0x2e   :  { %p529_p8 = por %p528_p7, %p527_p6 }
  0x30   :  { %p530_p9 = pnand %p529_p8, %p523_p5 }
  0x32   :  { %533 = shalt.err (!%p530_p9)
}
  0x33   :  { %48 = dma.hbm_to_vmem [thread:$0]  %s667_s2, 32, %s43_s17, [#allocation7], %s563_s25, %s563_s25, %s564_s26  }
  0x34   :  { %556 = dma.done.wait [#allocation4], 256  }
  0x35   :  { %557 = vsyncadd [#allocation4], 4294967040 }
  0x36   :  { %558 = dma.done.wait [#allocation7], 64  }
  0x37   :  { %559 = vsyncadd [#allocation7], 4294967232  ;;  %v569_v0 = vmov 0.0   ;;  %vm570_vm0 = vmmov 0   ;;  %vm67_vm1 = vcmask 261120   ;;  %v60_v1 = vld [vmem:[#allocation3] sm:$0xff]  ;;  %v66_v4 = vstv %s668_s3 }
  0x38   :  { %430 = vmatprep.subr.mxu0 %v569_v0  ;;  %435 = vmatprep.subr.mxu1 %v569_v0  ;;  %v61_v2 = vld [vmem:[#allocation3 + $0x8] sm:$0xff]  ;;  %v64_v3 = vld [vmem:[#allocation8] sm:$0x1]  ;;  %v62_v5 = vld [vmem:[#allocation6] sm:$0x1]  ;;  %vm225_vm6 = vcmask 57344  }
  0x39   :  { %432 = vmatprep.mubr.msk.f32.mxu0 %vm570_vm0, %v569_v0  ;;  %437 = vmatprep.mubr.msk.f32.mxu1 %vm570_vm0, %v569_v0  ;;  %v63_v6 = vld [vmem:[#allocation6 + $0x1] sm:$0x1]  ;;  %vm217_vm2 = vcmp.gt.f32.partialorder %v62_v5, 0.0  ;;  %vm248_vm9 = vcmask 64512   ;;  %vm395_vm10 = vcmask 253952   ;;  %s571_s3 = smov [#allocation9]  }
  0x3a   :  { %431 = vmatpush3.xpose.msk.msra.mxu0 %vm67_vm1, %v60_v1  ;;  %436 = vmatpush3.xpose.msk.msra.mxu1 %vm67_vm1, %v61_v2  ;;  %vm218_vm3 = vcmp.gt.f32.partialorder %v63_v6, 0.0  ;;  %s403_s30 = sshll.u32 %s571_s3, 4  ;;  %s404_s30 = int_to_ptr.vmem [resolvable:$true] %s403_s30 }
  0x3b   :  { %440 = vmatprep.subr.mxu0 %v569_v0  ;;  %445 = vmatprep.subr.mxu1 %v569_v0  ;;  %s534_s5 = scalar_lea.vmem %s404_s30, 32  ;;  %p539_p11 = scmp.lt.s32.totalorder %s404_s30, %s404_s30 }
  0x3c   :  { %p535_p10 = scmp.ne.s32.totalorder %s404_s30, %s534_s5  ;;  %p540_p12 = scmp.lt.s32.totalorder %s534_s5, %s534_s5 }
  0x3d   :  { %433 = vmatmul.mubr.msk.f32.vlgmr.msra.gmra.mrb[0].mxu0 %vm67_vm1, %v64_v3  ;;  %438 = vmatmul.mubr.msk.f32.vlgmr.msra.gmra.mrb[0].mxu1 %vm67_vm1, %v64_v3 }
  0x3e   :  { %441 = vmatpush3.msra.mxu0 %v60_v1  ;;  %442 = vmatprep.mubr.msk.f32.mxu0 %vm570_vm0, %v569_v0  ;;  %p541_p13 = por %p540_p12, %p539_p11 }
  0x3f   :  { %446 = vmatpush3.msra.mxu1 %v61_v2  ;;  %447 = vmatprep.mubr.msk.f32.mxu1 %vm570_vm0, %v569_v0 }
  0x40   :  { %p542_p0 = pnand %p541_p13, %p535_p10 }
 0x110   :  { %v140_v7 = vpop.f32.mrb[0].mxu0  ;;  %v213_v8 = vpop.f32.mrb[0].mxu1 }
 0x111   :  { %v141_v9 = vadd.f32 %v140_v7, %v66_v4  ;;  %v434_v10 = vpop.f32.mrb[1].mxu0  ;;  %v214_v11 = vadd.f32 %v213_v8, %v66_v4  ;;  %v439_v12 = vpop.f32.mrb[1].mxu1 }
 0x113   :  { %vm219_vm4 = vcmp.ne.f32.partialorder %v141_v9, 0.0  ;;  %vm220_vm5 = vcmp.ne.f32.partialorder %v214_v11, 0.0 }
 0x114   :  { %vm221_vm7 = vmand %vm217_vm2, %vm219_vm4 }
 0x115   :  { %v223_v13 = vsel %vm221_vm7, %v141_v9, -1e+20  ;;  %vm222_vm8 = vmand %vm218_vm3, %vm220_vm5 }
 0x116   :  { %v226_v14 = vsel %vm225_vm6, %v223_v13, -inf  ;;  %v224_v15 = vsel %vm222_vm8, %v214_v11, -1e+20 }
 0x117   :  { %227 = vmax.xlane.f32.xlu0 %v226_v14  ;;  %v229_v16 = vsel %vm225_vm6, %v224_v15, -inf }
 0x11b   :  { %230 = vmax.xlane.f32.xlu0 %v229_v16 }
 0x1a4   :  { %v228_v17 = vpop.xlane.xlu0 %227 }
 0x1a5   :  { %v232_v18 = vsub.f32 %v223_v13, %v228_v17 }
 0x1a7   :  { %v234_v19 = vmul.f32 1.442695, %v232_v18 }
 0x1a8   :  { %v231_v20 = vpop.xlane.xlu0 %230 }
 0x1a9   :  { %460 = vpow2.f32 %v234_v19  ;;  %v233_v21 = vsub.f32 %v224_v15, %v231_v20 }
 0x1ab   :  { %v236_v22 = vmul.f32 1.442695, %v233_v21 }
 0x1ad   :  { %462 = vpow2.f32 %v236_v22 }
 0x1b3   :  { %v461_v23 = vpop.eup %460 }
 0x1b4   :  { %v238_v24 = vsel %vm225_vm6, %v461_v23, 0.0 }
 0x1b5   :  { %239 = vadd.xlane.f32.xlu1 %v238_v24 }
 0x1b7   :  { %v463_v25 = vpop.eup %462 }
 0x1b8   :  { %v241_v26 = vsel %vm225_vm6, %v463_v25, 0.0 }
 0x1b9   :  { %242 = vadd.xlane.f32.xlu1 %v241_v26 }
 0x242   :  { %v240_v27 = vpop.xlane.xlu1 %239 }
 0x243   :  { %464 = vrcp.f32 %v240_v27 }
 0x246   :  { %v243_v28 = vpop.xlane.xlu1 %242 }
 0x247   :  { %466 = vrcp.f32 %v243_v28 }
 0x24d   :  { %v465_v29 = vpop.eup %464 }
 0x24e   :  { %v245_v30 = vmul.f32 %v465_v29, %v461_v23 }
 0x250   :  { %443 = vmatmul.mubr.msk.f32.vlgmr.msra.gmra.mrb[2].mxu0 %vm248_vm9, %v245_v30 }
 0x251   :  { %v467_v31 = vpop.eup %466 }
 0x252   :  { %v247_v32 = vmul.f32 %v467_v31, %v463_v25 }
 0x254   :  { %448 = vmatmul.mubr.msk.f32.vlgmr.msra.gmra.mrb[2].mxu1 %vm248_vm9, %v247_v32 }
 0x323   :  { %v318_v33 = vpop.f32.mrb[2].mxu0 }
 0x324   :  { %396 = vst.msk [vmem:[#allocation9] sm:$0x1] %vm395_vm10, %v318_v33  ;;  %v444_v34 = vpop.f32.mrb[3].mxu0 }
 0x327   :  { %v391_v35 = vpop.f32.mrb[2].mxu1 }
 0x328   :  { %397 = vst.msk [vmem:[#allocation9 + $0x1] sm:$0x1] %vm395_vm10, %v391_v35  ;;  %v449_v36 = vpop.f32.mrb[3].mxu1 }
 0x329   :  { %545 = shalt.err (!%p542_p0)
}
 0x32a   :  { %s546_s8 = scalar_lea.hbm %s669_s4, 32 }
 0x32b   :  { %p547_p1 = scmp.ne.s32.totalorder %s669_s4, %s546_s8  ;;  %p550_p2 = scmp.lt.u32.totalorder %s546_s8, %s669_s4 }
 0x32d   :  { %p552_p3 = pnand %p550_p2, %p547_p1 }
 0x32f   :  { %555 = shalt.err (!%p552_p3)
}
 0x330   :  { %409 = dma.vmem_to_hbm [thread:$0]  %s404_s30, 32, %s669_s4, [#allocation5], %s563_s25, %s563_s25, %s564_s26  }
 0x331   :  { %560 = dma.done.wait [#allocation5], 32  }
 0x332   :  { %561 = vsyncadd [#allocation5], 4294967264 }
 0x333   :  { %413 = vsyncpa [#allocation4], 1 }
 0x334   :  { %414 = vsyncpa [#allocation7], 1 }
 0x335   :  { %415 = vsyncpa [#allocation5], 1 }

</bundles_post_ra>
